<compile_context>
chip_gen: v6e
topology: v6e:2x2x1
jax: 0.10.0
libtpu: 0.0.40
codegen_flags: <defaults>
</compile_context>

<pallas_src>
import jax
import jax.numpy as jnp
from jax.experimental import pallas as pl
from jax.experimental.pallas import tpu as pltpu

_LANE = 128
_SUBLANE = 8
_MIN_GRID_STEPS = 8                       # >= 4 steps per TensorCore on v7x
_MAX_LANES_PER_BLOCK = 256 * 1024         # ~256Ki lanes per grid step
_VMEM_BUDGET_BYTES = 12 * 1024 * 1024     # under the 16 MiB v5e scoped default
_SMALL_BYTES = 1 << 20                    # below this a fused jnp.sum wins


def _make_vdn_kernel(acc_dtype):
    def _vdn_kernel(qs_ref, out_ref):
        # qs_ref:  (n_agents, tb, 128) dense block (no sublane padding)
        # out_ref: (tb, 128) dense block
        q = qs_ref[...]                                      # one dense load
        out_ref[...] = jnp.sum(q.astype(acc_dtype), axis=0).astype(out_ref.dtype)
    return _vdn_kernel


def _choose_tile_blocks(m128, n_agents, itemsize, max_lanes_per_block):
    """Pick the lane-block tile (in units of 128-lane rows)."""
    # Double-buffered input + output VMEM bytes per 128-lane row.
    per_tb = 2 * _LANE * itemsize * (n_agents + 1)
    vmem_tb = max(_SUBLANE, (_VMEM_BUDGET_BYTES // per_tb) // _SUBLANE * _SUBLANE)
    cap_tb = max(_SUBLANE, (max_lanes_per_block // _LANE) // _SUBLANE * _SUBLANE)
    max_tb = min(vmem_tb, cap_tb)
    # Aim for >= _MIN_GRID_STEPS grid steps when there is enough data, keeping
    # the block's second-last dim a multiple of 8 (layout-legal).
    want = ((pl.cdiv(m128, _MIN_GRID_STEPS) + _SUBLANE - 1) // _SUBLANE) * _SUBLANE
    tb = min(max_tb, want)
    if tb >= m128:
        tb = m128                           # full-extent block: always legal
    return tb


def _vdn_sum_agents_major_pallas(qs_nm, *, max_lanes_per_block=_MAX_LANES_PER_BLOCK):
    """Sum over agents. qs_nm: [n_agents, M] agents-major. Returns [M]."""
    n, m = qs_nm.shape
    if m % _LANE != 0:
        # Tiny (<128 lane) tail pad; only reached when the Pallas path is
        # forced at a ragged M (the auto heuristics route ragged M to the
        # fused jnp.sum fallback instead, which is a single HBM pass).
        qs_nm = jnp.pad(qs_nm, ((0, 0), (0, (-m) % _LANE)))
    m_pad = qs_nm.shape[1]
    m128 = m_pad // _LANE
    qs_3d = qs_nm.reshape(n, m128, _LANE)   # contiguous reshape -> free bitcast

    itemsize = jnp.dtype(qs_nm.dtype).itemsize
    tb = _choose_tile_blocks(m128, n, itemsize, max_lanes_per_block)
    grid = pl.cdiv(m128, tb)                # ragged edge block masked by Pallas

    acc_dtype = (jnp.float32 if jnp.issubdtype(qs_nm.dtype, jnp.floating)
                 else jnp.int32)

    out = pl.pallas_call(
        _make_vdn_kernel(acc_dtype),
        out_shape=jax.ShapeDtypeStruct((m128, _LANE), qs_nm.dtype),
        grid=(grid,),
        in_specs=[pl.BlockSpec((n, tb, _LANE), lambda i: (0, i, 0))],
        out_specs=pl.BlockSpec((tb, _LANE), lambda i: (i, 0)),
        compiler_params=pltpu.CompilerParams(
            dimension_semantics=("parallel",)),   # split grid over both TCs
    )(qs_3d)

    return out.reshape(m_pad)[:m]


def vdn_mixer_agents_major(qs_am, state=None, *, use_pallas=None,
                           max_lanes_per_block=_MAX_LANES_PER_BLOCK):
    """VDN mix for agents-major input (zero-copy Pallas path).

    qs_am: [n_agents, batch, seq]; returns [batch, seq, 1] (= sum over agents).
    """
    del state                               # unused by VDN; never DMA'd
    n, b, t = qs_am.shape
    m = b * t
    if use_pallas is None:
        use_pallas = (m % _LANE == 0 and
                      qs_am.size * jnp.dtype(qs_am.dtype).itemsize >= _SMALL_BYTES)
    if not use_pallas:
        return jnp.sum(qs_am, axis=0).reshape(b, t, 1)
    s = _vdn_sum_agents_major_pallas(qs_am.reshape(n, m),
                                     max_lanes_per_block=max_lanes_per_block)
    return s.reshape(b, t, 1)


def vdn_mixer(qs, state=None, *, use_pallas=False,
              max_lanes_per_block=_MAX_LANES_PER_BLOCK):
    """Module-faithful VDNMixer.forward: qs [batch, seq, n_agents] -> [batch, seq, 1].

    With the [B, T, N] layout a pallas_call needs an agents-major relayout
    first; XLA materializes that transpose as an extra full HBM read+write, so
    the default here is the XLA-fused reduce (a single HBM pass). Producers
    that can emit agents-major data should call vdn_mixer_agents_major.
    Set use_pallas=True to force the kernel (pays one transpose pass).
    """
    del state                               # unused by VDN; never DMA'd
    b, t, n = qs.shape
    m = b * t
    if not use_pallas:
        return jnp.sum(qs, axis=2, keepdims=True)
    qs_am = jnp.transpose(qs.reshape(m, n))  # one HBM pass; see docstring
    s = _vdn_sum_agents_major_pallas(qs_am,
                                     max_lanes_per_block=max_lanes_per_block)
    return s.reshape(b, t, 1)


if __name__ == "__main__":
    key = jax.random.PRNGKey(0)
    k1, k2, k3 = jax.random.split(key, 3)

    # 1) Module-faithful small QMIX shapes (batch=2, seq=8, n_agents=4,
    #    state_dim=32): auto path uses the fused reduce (kernel not worth a
    #    standalone custom call at this size).
    B, T, N, S = 2, 8, 4, 32
    qs = jax.random.normal(k1, (B, T, N), dtype=jnp.float32)
    state = jax.random.normal(k2, (B, T, S), dtype=jnp.float32)
    ref = jnp.sum(qs, axis=2, keepdims=True)

    out_auto = jax.block_until_ready(vdn_mixer(qs, state))
    assert out_auto.shape == (B, T, 1), out_auto.shape
    assert jnp.allclose(out_auto, ref, atol=1e-6, rtol=1e-6), "auto path mismatch"

    # 2) Forced Pallas path through the module-faithful wrapper (same math;
    #    exercises the tiny-tail-pad branch since M=16 is ragged).
    out_pallas = jax.block_until_ready(vdn_mixer(qs, state, use_pallas=True))
    assert out_pallas.shape == (B, T, 1), out_pallas.shape
    assert jnp.allclose(out_pallas, ref, atol=1e-5, rtol=1e-5), "pallas path mismatch"

    # 3) Agents-major zero-copy Pallas path at a shape that exercises a
    #    multi-step grid with a masked ragged edge block
    #    (M = 2560 lanes -> m128 = 20 rows, tile = 8 rows, grid = 3 steps).
    B2, T2 = 16, 160
    qs_am = jax.random.normal(k3, (N, B2, T2), dtype=jnp.float32)
    out_am = jax.block_until_ready(
        vdn_mixer_agents_major(qs_am, state=None, use_pallas=True))
    ref_am = jnp.sum(qs_am, axis=0).reshape(B2, T2, 1)
    assert out_am.shape == (B2, T2, 1), out_am.shape
    assert jnp.allclose(out_am, ref_am, atol=1e-5, rtol=1e-5), "agents-major mismatch"

    print("KERNEL_OK")
</pallas_src>

<mosaic_0001>
module attributes {stable_mosaic.version = 11 : i64} {
  func.func @_vdn_kernel(%arg0: i32, %arg1: memref<4x1x128xf32, #tpu.memory_space<vmem>>, %arg2: memref<1x128xf32, #tpu.memory_space<vmem>>) attributes {dimension_semantics = [#tpu.dimension_semantics<parallel>], iteration_bounds = array<i64: 1>, scalar_prefetch = 0 : i64, scratch_operands = 0 : i64, tpu.core_type = #tpu.core_type<tc>, window_params = [{transform_indices = @transform_0, window_bounds = array<i64: 4, 1, 128>}, {transform_indices = @transform_1, window_bounds = array<i64: 1, 128>}]} {
    %c0 = arith.constant 0 : index
    %c0_0 = arith.constant 0 : index
    %c0_1 = arith.constant 0 : index
    %0 = vector.load %arg1[%c0, %c0_0, %c0_1] : memref<4x1x128xf32, #tpu.memory_space<vmem>>, vector<4x1x128xf32>
    %cst = arith.constant dense<0.000000e+00> : vector<1x128xf32>
    %1 = vector.multi_reduction <add>, %0, %cst [0] : vector<4x1x128xf32> to vector<1x128xf32>
    %c0_2 = arith.constant 0 : index
    %c0_3 = arith.constant 0 : index
    %2 = vector.load %arg2[%c0_2, %c0_3] : memref<1x128xf32, #tpu.memory_space<vmem>>, vector<1x128xf32>
    tpu.vector_store %arg2[%c0_2, %c0_3], %1 {strides = array<i32>} : memref<1x128xf32, #tpu.memory_space<vmem>>, vector<1x128xf32>,
    return
  }
  func.func @transform_0(%arg0: i32) -> (i32, i32, i32) {
    %c0_i32 = arith.constant 0 : i32
    %c0_i32_0 = arith.constant 0 : i32
    %c0_i32_1 = arith.constant 0 : i32
    return %c0_i32, %arg0, %c0_i32_0 : i32, i32, i32
  }
  func.func @transform_1(%arg0: i32) -> (i32, i32) {
    %c0_i32 = arith.constant 0 : i32
    %c0_i32_0 = arith.constant 0 : i32
    return %arg0, %c0_i32 : i32, i32
  }
}

</mosaic_0001>

<bundles_post_ra>
// kernel: tpu_custom_call.1
= control target key start
LH: loop header
LB: loop body
LE: loop exit
PB: predicated region body
PF: predicated region fallthrough
CT: control target
= control target key end

     0   :  { %6 = vsyncpa [#allocation3], 0  ;;  %s119_s0 = inlined_call_operand.hbm [shape: f32[4,1,128], index: 0, kind: input, shape index: {}]   ;;  %s120_s1 = inlined_call_operand.hbm [shape: f32[1,128], index: 1, kind: output, shape index: {}]  }
   0x1   :  { %7 = vsyncpa [#allocation4], 0  ;;  %s99_s6 = smov [#allocation2]  }
   0x2   :  { %s13_s7 = sshll.u32 %s99_s6, 4  ;;  %s14_s7 = int_to_ptr.vmem [resolvable:$true] %s13_s7 }
   0x3   :  { %s63_s8 = scalar_lea.vmem %s14_s7, 64  ;;  %p68_p1 = scmp.lt.s32.totalorder %s14_s7, %s14_s7 }
   0x4   :  { %p64_p0 = scmp.ne.s32.totalorder %s14_s7, %s63_s8  ;;  %p69_p2 = scmp.lt.s32.totalorder %s63_s8, %s63_s8 }
   0x6   :  { %p70_p3 = por %p69_p2, %p68_p1 }
   0x8   :  { %p71_p4 = pnand %p70_p3, %p64_p0 }
   0xa   :  { %74 = shalt.err (!%p71_p4)
}
   0xb   :  { %s100_s9 = smov 16   ;;  %s101_s10 = smov 1  }
   0xc   :  { %19 = dma.hbm_to_vmem [thread:$0]  %s119_s0, 64, %s14_s7, [#allocation3], %s100_s9, %s100_s9, %s101_s10  }
   0xd   :  { %95 = dma.done.wait [#allocation3], 64  }
   0xe   :  { %96 = vsyncadd [#allocation3], 4294967232  ;;  %vm27_vm0 = vcmask 1040384   ;;  %v23_v0 = vld [vmem:[#allocation2] sm:$0x1]  ;;  %s102_s13 = smov [#allocation5]  }
   0xf   :  { %v24_v1 = vld [vmem:[#allocation2 + $0x1] sm:$0x1]  ;;  %v25_v2 = vld [vmem:[#allocation2 + $0x2] sm:$0x1]  ;;  %v26_v3 = vld [vmem:[#allocation2 + $0x3] sm:$0x1] }
  0x10   :  { %v28_v4 = vsel %vm27_vm0, %v23_v0, 0.0  ;;  %v29_v5 = vsel %vm27_vm0, %v24_v1, 0.0  ;;  %v31_v6 = vsel %vm27_vm0, %v25_v2, 0.0  ;;  %v33_v8 = vsel %vm27_vm0, %v26_v3, 0.0  ;;  %s42_s14 = sshll.u32 %s102_s13, 4  ;;  %s43_s14 = int_to_ptr.vmem [resolvable:$true] %s42_s14 }
  0x11   :  { %v30_v7 = vadd.f32 %v29_v5, %v28_v4  ;;  %s75_s15 = scalar_lea.vmem %s43_s14, 16  ;;  %s79_s0 = scalar_lea.vmem %s43_s14, 32 }
  0x12   :  { %p76_p5 = scmp.ne.s32.totalorder %s43_s14, %s75_s15  ;;  %p80_p6 = scmp.lt.s32.totalorder %s43_s14, %s43_s14 }
  0x13   :  { %v32_v9 = vadd.f32 %v31_v6, %v30_v7  ;;  %p81_p7 = scmp.lt.s32.totalorder %s79_s0, %s75_s15 }
  0x15   :  { %v34_v10 = vadd.f32 %v33_v8, %v32_v9  ;;  %p82_p8 = por %p81_p7, %p80_p6 }
  0x17   :  { %35 = vst [vmem:[#allocation5] sm:$0x1] %v34_v10  ;;  %p83_p9 = pnand %p82_p8, %p76_p5 }
  0x19   :  { %86 = shalt.err (!%p83_p9)
}
  0x1a   :  { %45 = dma.vmem_to_hbm [thread:$0]  %s43_s14, 16, %s120_s1, [#allocation4]  }
  0x1b   :  { %97 = dma.done.wait [#allocation4], 16  }
  0x1c   :  { %98 = vsyncadd [#allocation4], 4294967280 }
  0x1d   :  { %49 = vsyncpa [#allocation3], 1 }
  0x1e   :  { %50 = vsyncpa [#allocation4], 1 }

</bundles_post_ra>
